<compile_context>
chip_gen: v5e
topology: v5e:2x2
jax: 0.10.0
libtpu: 0.0.40
codegen_flags: <defaults>
</compile_context>

<pallas_src>
import functools

import jax
import jax.numpy as jnp
from jax.experimental import pallas as pl
from jax.experimental.pallas import tpu as pltpu


def _critic_kernel(sa_ref, w1_ref, b1_ref, w2_ref, b2_ref, w3_ref, b3_ref,
                   q_ref):
    """One batch tile of q = fc3(relu(fc2(relu(fc1([s|a])))))."""
    wd = w1_ref.dtype  # bf16 (default) or f32; accumulation is always f32.

    # fc1: single fused matmul over the packed [state | action] operand.
    h1 = jnp.dot(sa_ref[...].astype(wd), w1_ref[...],
                 preferred_element_type=jnp.float32)
    h1 = jnp.maximum(h1 + b1_ref[...], 0.0)

    # fc2 (dominant matmul).
    h2 = jnp.dot(h1.astype(wd), w2_ref[...],
                 preferred_element_type=jnp.float32)
    h2 = jnp.maximum(h2 + b2_ref[...], 0.0)

    # fc3 (out_features == 1): contract w3 against h2's hidden axis (trans-B
    # matmul, q @ k.T pattern) so the result is lane-dense (lanes = batch)
    # instead of a masked 1-lane column.  w3 is pre-broadcast to 8 sublanes at
    # init; row 0 of the result is the answer.
    q8 = jax.lax.dot_general(w3_ref[...], h2.astype(wd),
                             (((1,), (1,)), ((), ())),
                             preferred_element_type=jnp.float32)  # (8, TB)
    q_ref[...] = (q8[0:1, :] + b3_ref[0, 0]).astype(q_ref.dtype)


def _round_up(x, m):
    return (x + m - 1) // m * m


def _choose_tiling(batch, block_batch):
    """Pick (tile_batch, padded_batch, num_tiles) satisfying Mosaic rules."""
    # Sanitize user value: multi-tile lane-dense output needs TB % 128 == 0.
    block_batch = max(128, _round_up(int(block_batch), 128))
    single = _round_up(batch, 8)
    if single <= 128:
        # Tiny batch: one 8-aligned tile (block == full array, so no 128 rule).
        return single, single, 1
    # Larger batches: >= 2 lane-dense, 128-aligned tiles so v7x's two
    # TensorCores both get work (extra grid step is ~0.35 us on v5e/v6e).
    half = _round_up(-(-batch // 2), 128)
    tb = min(block_batch, half)
    bp = _round_up(batch, tb)
    return tb, bp, bp // tb


@functools.partial(jax.jit, static_argnames=("block_batch",))
def critic_forward(state, action, params, *, block_batch=1024):
    """Pallas implementation of Critic.forward(state, action) -> (B, 1)."""
    w1, b1, w2, b2, w3, b3 = params
    B = state.shape[0]
    SA = w1.shape[0]
    H = w2.shape[0]

    # Pack [state | action] once in the wrapper (tiny copy) so fc1 is one dot.
    sa = jnp.concatenate([state.astype(jnp.float32),
                          action.astype(jnp.float32)], axis=1)

    TB, Bp, nb = _choose_tiling(B, block_batch)
    if Bp != B:
        sa = jnp.pad(sa, ((0, Bp - B), (0, 0)))

    resident = lambda i: (0, 0)        # weights/biases: same block every step

    q_row = pl.pallas_call(
        _critic_kernel,
        out_shape=jax.ShapeDtypeStruct((1, Bp), jnp.float32),
        grid=(nb,),
        in_specs=[
            pl.BlockSpec((TB, SA), lambda i: (i, 0)),          # packed [s|a]
            pl.BlockSpec((SA, H), resident),                   # w1
            pl.BlockSpec((1, H), resident),                    # b1
            pl.BlockSpec((H, H), resident),                    # w2
            pl.BlockSpec((1, H), resident),                    # b2
            pl.BlockSpec((8, H), resident),                    # w3 (8 sublanes)
            pl.BlockSpec(memory_space=pltpu.MemorySpace.SMEM),  # b3 scalar
        ],
        out_specs=pl.BlockSpec((1, TB), lambda i: (0, i)),     # lane-dense q
        compiler_params=pltpu.CompilerParams(
            dimension_semantics=("parallel",)),
    )(sa, w1, b1, w2, b2, w3, b3)

    return q_row.reshape(Bp, 1)[:B]


def init_critic_params(key, state_dim, action_dim, hidden=256,
                       weight_dtype=jnp.bfloat16):
    """nn.Linear-style init (U[-1/sqrt(fan_in), +]) stored in kernel layout.

    Weights are [in, out] (transpose of PyTorch) so y = x @ W + b needs no
    in-kernel transposes.  Weights are stored in `weight_dtype` (bf16 default
    for MXU throughput; pass jnp.float32 for exact-f32 parity).  Biases stay
    f32 (bias + ReLU run in f32 inside the kernel).
    """
    def linear(k, fan_in, fan_out):
        kw, kb = jax.random.split(k)
        bound = 1.0 / jnp.sqrt(float(fan_in))
        w = jax.random.uniform(kw, (fan_in, fan_out), jnp.float32,
                               minval=-bound, maxval=bound)
        b = jax.random.uniform(kb, (1, fan_out), jnp.float32,
                               minval=-bound, maxval=bound)
        return w, b

    k1, k2, k3 = jax.random.split(key, 3)
    w1, b1 = linear(k1, state_dim + action_dim, hidden)   # stacked [W1_s; W1_a]
    w2, b2 = linear(k2, hidden, hidden)
    w3_col, b3 = linear(k3, hidden, 1)
    w3 = jnp.tile(w3_col.T, (8, 1))   # (8, hidden): sublane broadcast hoisted
    wd = weight_dtype
    return (w1.astype(wd), b1, w2.astype(wd), b2, w3.astype(wd), b3)


def _reference_forward(state, action, params):
    """Pure-JAX reference, mathematically identical to PyTorch Critic.forward
    (weights cast up to f32, full-f32 math)."""
    w1, b1, w2, b2, w3, b3 = params
    sa = jnp.concatenate([state, action], axis=1)
    h1 = jnp.maximum(sa @ w1.astype(jnp.float32) + b1, 0.0)
    h2 = jnp.maximum(h1 @ w2.astype(jnp.float32) + b2, 0.0)
    return h2 @ w3[0:1].astype(jnp.float32).T + b3


if __name__ == "__main__":
    state_dim, action_dim = 3, 1   # Pendulum-v1

    key = jax.random.PRNGKey(0)
    kp, ks, ka = jax.random.split(key, 3)

    # --- Exact-f32 parity path (weight_dtype=f32), small inference batch. ---
    params_f32 = init_critic_params(kp, state_dim, action_dim,
                                    weight_dtype=jnp.float32)
    batch = 8
    state = jax.random.normal(ks, (batch, state_dim), jnp.float32)
    action = jax.random.uniform(ka, (batch, action_dim), jnp.float32,
                                minval=-2.0, maxval=2.0)
    q = critic_forward(state, action, params_f32)
    jax.block_until_ready(q)
    assert q.shape == (batch, 1)
    assert jnp.allclose(q, _reference_forward(state, action, params_f32),
                        atol=1e-4, rtol=1e-4)

    # --- Default bf16-weight path (MXU fast path), same small batch. ---
    params_bf16 = init_critic_params(kp, state_dim, action_dim)
    qb = critic_forward(state, action, params_bf16)
    jax.block_until_ready(qb)
    assert qb.shape == (batch, 1)
    assert jnp.allclose(qb, _reference_forward(state, action, params_bf16),
                        atol=5e-2, rtol=5e-2)

    # --- Training-style batch: multi-tile grid + batch padding path. ---
    batch2 = 300
    ks2, ka2 = jax.random.split(jax.random.PRNGKey(1))
    state2 = jax.random.normal(ks2, (batch2, state_dim), jnp.float32)
    action2 = jax.random.uniform(ka2, (batch2, action_dim), jnp.float32,
                                 minval=-2.0, maxval=2.0)
    q2 = critic_forward(state2, action2, params_bf16, block_batch=256)
    jax.block_until_ready(q2)
    assert q2.shape == (batch2, 1)
    assert jnp.allclose(q2, _reference_forward(state2, action2, params_bf16),
                        atol=5e-2, rtol=5e-2)

    print("KERNEL_OK")
</pallas_src>

<mosaic_0001>
module attributes {stable_mosaic.version = 11 : i64} {
  func.func @_critic_kernel(%arg0: i32, %arg1: memref<8x4xf32, #tpu.memory_space<vmem>>, %arg2: memref<4x256xf32, #tpu.memory_space<vmem>>, %arg3: memref<1x256xf32, #tpu.memory_space<vmem>>, %arg4: memref<256x256xf32, #tpu.memory_space<vmem>>, %arg5: memref<1x256xf32, #tpu.memory_space<vmem>>, %arg6: memref<8x256xf32, #tpu.memory_space<vmem>>, %arg7: memref<1x1xf32, #tpu.memory_space<smem>>, %arg8: memref<1x8xf32, #tpu.memory_space<vmem>>) attributes {dimension_semantics = [#tpu.dimension_semantics<parallel>], iteration_bounds = array<i64: 1>, scalar_prefetch = 0 : i64, scratch_operands = 0 : i64, tpu.core_type = #tpu.core_type<tc>, window_params = [{transform_indices = @transform_0, window_bounds = array<i64: 8, 4>}, {pipeline_mode = #tpu.pipeline_mode<synchronous>, transform_indices = @transform_1, window_bounds = array<i64: 4, 256>}, {pipeline_mode = #tpu.pipeline_mode<synchronous>, transform_indices = @transform_2, window_bounds = array<i64: 1, 256>}, {pipeline_mode = #tpu.pipeline_mode<synchronous>, transform_indices = @transform_3, window_bounds = array<i64: 256, 256>}, {pipeline_mode = #tpu.pipeline_mode<synchronous>, transform_indices = @transform_4, window_bounds = array<i64: 1, 256>}, {pipeline_mode = #tpu.pipeline_mode<synchronous>, transform_indices = @transform_5, window_bounds = array<i64: 8, 256>}, {transform_indices = @transform_6, window_bounds = array<i64: 1, 1>}, {transform_indices = @transform_7, window_bounds = array<i64: 1, 8>}]} {
    %c0 = arith.constant 0 : index
    %c0_0 = arith.constant 0 : index
    %0 = vector.load %arg1[%c0, %c0_0] : memref<8x4xf32, #tpu.memory_space<vmem>>, vector<8x4xf32>
    %c0_1 = arith.constant 0 : index
    %c0_2 = arith.constant 0 : index
    %1 = vector.load %arg2[%c0_1, %c0_2] : memref<4x256xf32, #tpu.memory_space<vmem>>, vector<4x256xf32>
    %cst = arith.constant dense<0.000000e+00> : vector<8x256xf32>
    %2 = tpu.matmul %0, %1, %cst {dimension_numbers = #tpu.dot_dimension_numbers<[1], [0], [0], [1], [0, 0, 1, 1], [], []>} : vector<8x4xf32>, vector<4x256xf32>, vector<8x256xf32> -> vector<8x256xf32>
    %c0_3 = arith.constant 0 : index
    %c0_4 = arith.constant 0 : index
    %3 = vector.load %arg3[%c0_3, %c0_4] : memref<1x256xf32, #tpu.memory_space<vmem>>, vector<1x256xf32>
    %4 = vector.broadcast %3 : vector<1x256xf32> to vector<8x256xf32>
    %5 = arith.addf %2, %4 : vector<8x256xf32>
    %cst_5 = arith.constant 0.000000e+00 : f32
    %6 = vector.broadcast %cst_5 : f32 to vector<8x256xf32>
    %7 = arith.maximumf %5, %6 : vector<8x256xf32>
    %c0_6 = arith.constant 0 : index
    %c0_7 = arith.constant 0 : index
    %8 = vector.load %arg4[%c0_6, %c0_7] : memref<256x256xf32, #tpu.memory_space<vmem>>, vector<256x256xf32>
    %cst_8 = arith.constant dense<0.000000e+00> : vector<8x256xf32>
    %9 = tpu.matmul %7, %8, %cst_8 {dimension_numbers = #tpu.dot_dimension_numbers<[1], [0], [0], [1], [0, 0, 1, 1], [], []>} : vector<8x256xf32>, vector<256x256xf32>, vector<8x256xf32> -> vector<8x256xf32>
    %c0_9 = arith.constant 0 : index
    %c0_10 = arith.constant 0 : index
    %10 = vector.load %arg5[%c0_9, %c0_10] : memref<1x256xf32, #tpu.memory_space<vmem>>, vector<1x256xf32>
    %11 = vector.broadcast %10 : vector<1x256xf32> to vector<8x256xf32>
    %12 = arith.addf %9, %11 : vector<8x256xf32>
    %cst_11 = arith.constant 0.000000e+00 : f32
    %13 = vector.broadcast %cst_11 : f32 to vector<8x256xf32>
    %14 = arith.maximumf %12, %13 : vector<8x256xf32>
    %c0_12 = arith.constant 0 : index
    %c0_13 = arith.constant 0 : index
    %15 = vector.load %arg6[%c0_12, %c0_13] : memref<8x256xf32, #tpu.memory_space<vmem>>, vector<8x256xf32>
    %cst_14 = arith.constant dense<0.000000e+00> : vector<8x8xf32>
    %16 = tpu.matmul %15, %14, %cst_14 {dimension_numbers = #tpu.dot_dimension_numbers<[1], [1], [0], [0], [0, 0, 1, 0], [], []>} : vector<8x256xf32>, vector<8x256xf32>, vector<8x8xf32> -> vector<8x8xf32>
    %17 = vector.extract_strided_slice %16 {offsets = [0, 0], sizes = [1, 8], strides = [1, 1]} : vector<8x8xf32> to vector<1x8xf32>
    %c0_15 = arith.constant 0 : index
    %c0_16 = arith.constant 0 : index
    %18 = memref.load %arg7[%c0_15, %c0_16] : memref<1x1xf32, #tpu.memory_space<smem>>
    %19 = vector.broadcast %18 : f32 to vector<1x8xf32>
    %20 = arith.addf %17, %19 : vector<1x8xf32>
    %c0_17 = arith.constant 0 : index
    %c0_18 = arith.constant 0 : index
    %21 = vector.load %arg8[%c0_17, %c0_18] : memref<1x8xf32, #tpu.memory_space<vmem>>, vector<1x8xf32>
    tpu.vector_store %arg8[%c0_17, %c0_18], %20 {strides = array<i32>} : memref<1x8xf32, #tpu.memory_space<vmem>>, vector<1x8xf32>,
    return
  }
  func.func @transform_0(%arg0: i32) -> (i32, i32) {
    %c0_i32 = arith.constant 0 : i32
    %c0_i32_0 = arith.constant 0 : i32
    return %arg0, %c0_i32 : i32, i32
  }
  func.func @transform_1(%arg0: i32) -> (i32, i32) {
    %c0_i32 = arith.constant 0 : i32
    %c0_i32_0 = arith.constant 0 : i32
    %c0_i32_1 = arith.constant 0 : i32
    return %c0_i32, %c0_i32_0 : i32, i32
  }
  func.func @transform_2(%arg0: i32) -> (i32, i32) {
    %c0_i32 = arith.constant 0 : i32
    %c0_i32_0 = arith.constant 0 : i32
    %c0_i32_1 = arith.constant 0 : i32
    return %c0_i32, %c0_i32_0 : i32, i32
  }
  func.func @transform_3(%arg0: i32) -> (i32, i32) {
    %c0_i32 = arith.constant 0 : i32
    %c0_i32_0 = arith.constant 0 : i32
    %c0_i32_1 = arith.constant 0 : i32
    return %c0_i32, %c0_i32_0 : i32, i32
  }
  func.func @transform_4(%arg0: i32) -> (i32, i32) {
    %c0_i32 = arith.constant 0 : i32
    %c0_i32_0 = arith.constant 0 : i32
    %c0_i32_1 = arith.constant 0 : i32
    return %c0_i32, %c0_i32_0 : i32, i32
  }
  func.func @transform_5(%arg0: i32) -> (i32, i32) {
    %c0_i32 = arith.constant 0 : i32
    %c0_i32_0 = arith.constant 0 : i32
    %c0_i32_1 = arith.constant 0 : i32
    return %c0_i32, %c0_i32_0 : i32, i32
  }
  func.func @transform_6(%arg0: i32) -> (i32, i32) {
    %c0_i32 = arith.constant 0 : i32
    %c0_i32_0 = arith.constant 0 : i32
    %c0_i32_1 = arith.constant 0 : i32
    return %c0_i32, %c0_i32_0 : i32, i32
  }
  func.func @transform_7(%arg0: i32) -> (i32, i32) {
    %c0_i32 = arith.constant 0 : i32
    %c0_i32_0 = arith.constant 0 : i32
    return %c0_i32, %arg0 : i32, i32
  }
}

</mosaic_0001>

<bundles_post_ra>
// kernel: critic_forward.1
= control target key start
LH: loop header
LB: loop body
LE: loop exit
PB: predicated region body
PF: predicated region fallthrough
CT: control target
= control target key end

     0   :  { %13 = vsyncpa [#allocation4], 0  ;;  %s454_s0 = inlined_call_operand.vmem [shape: f32[8,4], index: 0, kind: input, shape index: {}]   ;;  %s455_s1 = inlined_call_operand.vmem [shape: f32[4,256], index: 1, kind: input, shape index: {}]   ;;  %s456_s2 = inlined_call_operand.vmem [shape: f32[1,256], index: 2, kind: input, shape index: {}]   ;;  %s457_s3 = inlined_call_operand.hbm [shape: f32[256,256], index: 3, kind: input, shape index: {}]   ;;  %s458_s4 = inlined_call_operand.vmem [shape: f32[1,256], index: 4, kind: input, shape index: {}]   ;;  %s459_s5 = inlined_call_operand.vmem [shape: f32[8,256], index: 5, kind: input, shape index: {}]   ;;  %s460_s6 = inlined_call_operand.<no memory space> [shape: f32[1,1], index: 6, kind: input, shape index: {}]   ;;  %s461_s7 = inlined_call_operand.hbm [shape: f32[1,8], index: 7, kind: output, shape index: {}]  }
   0x1   :  { %14 = vsyncpa [#allocation5], 0  ;;  %s25_s26 = sshll.u32 %s457_s3, 4  ;;  %s383_s27 = smov [#allocation3]   ;;  %s26_s26 = int_to_ptr.hbm [resolvable:$true] %s25_s26 }
   0x2   :  { %s27_s28 = sshll.u32 %s383_s27, 4  ;;  %s384_s29 = smov 256   ;;  %s28_s28 = int_to_ptr.vmem [resolvable:$true] %s27_s28 }
   0x3   :  { %s385_s30 = smov 16  }
   0x4   :  { %33 = dma.hbm_to_vmem [thread:$0]  %s26_s26, 8192, %s28_s28, [#allocation4], %s384_s29, %s384_s29, %s385_s30  }
   0x5   :  { %379 = dma.done.wait [#allocation4], 8192  }
   0x6   :  { %380 = vsyncadd [#allocation4], 4294959104  ;;  %v45_v0 = vld [vmem:[%s455_s1] sm:$0xff]  ;;  %v137_v1 = vld [vmem:[#allocation3 + $0xf0] sm:$0xff]  ;;  %vm60_vm0 = vcmask 1043456   ;;  %vm56_vm1 = vcmask 31744  }
   0x7   :  { %53 = vst [vmem:[#allocation1] ss:$2 sm:$0xff] %v45_v0  ;;  %177 = vmatpush.msra.mxu2 %v137_v1  ;;  %v135_v2 = vld [vmem:[#allocation3 + $0xe0] sm:$0xff]  ;;  %v169_v3 = vld [vmem:[#allocation3 + $0x1f0] sm:$0xff]  ;;  %v44_v9 = vld [vmem:[%s454_s0] sm:$0xff]  ;;  %s386_s17 = smov [#allocation6]  }
   0x8   :  { %197 = vmatpush.msra.mxu3 %v169_v3  ;;  %v133_v4 = vld [vmem:[#allocation3 + $0xd0] sm:$0xff]  ;;  %v167_v5 = vld [vmem:[#allocation3 + $0x1e0] sm:$0xff]  ;;  %v138_v10 = vld [vmem:[#allocation3 + $0xf8] sm:$0xff]  ;;  %s311_s18 = sshll.u32 %s386_s17, 4  ;;  %s313_s21 = sshll.u32 %s461_s7, 4  ;;  %vm304_vm2 = vcmask 57344   ;;  %s312_s18 = int_to_ptr.vmem [resolvable:$true] %s311_s18  ;;  %s314_s21 = int_to_ptr.hbm [resolvable:$true] %s313_s21 }
   0x9   :  { %178 = vmatpush.msra.mxu2 %v135_v2  ;;  %v131_v6 = vld [vmem:[#allocation3 + $0xc0] sm:$0xff]  ;;  %v165_v7 = vld [vmem:[#allocation3 + $0x1d0] sm:$0xff]  ;;  %v170_v11 = vld [vmem:[#allocation3 + $0x1f8] sm:$0xff] }
   0xa   :  { %198 = vmatpush.msra.mxu3 %v167_v5  ;;  %v163_v8 = vld [vmem:[#allocation3 + $0x1c0] sm:$0xff]  ;;  %v129_v14 = vld [vmem:[#allocation3 + $0xb0] sm:$0xff]  ;;  %v136_v16 = vld [vmem:[#allocation3 + $0xe8] sm:$0xff] }
   0xb   :  { %179 = vmatpush.msra.mxu2 %v133_v4  ;;  %v161_v15 = vld [vmem:[#allocation3 + $0x1b0] sm:$0xff]  ;;  %v168_v17 = vld [vmem:[#allocation3 + $0x1e8] sm:$0xff]  ;;  %v127_v18 = vld [vmem:[#allocation3 + $0xa0] sm:$0xff] }
   0xc   :  { %199 = vmatpush.msra.mxu3 %v165_v7  ;;  %v159_v19 = vld [vmem:[#allocation3 + $0x1a0] sm:$0xff]  ;;  %v134_v20 = vld [vmem:[#allocation3 + $0xd8] sm:$0xff]  ;;  %v125_v22 = vld [vmem:[#allocation3 + $0x90] sm:$0xff] }
   0xd   :  { %180 = vmatpush.msra.mxu2 %v131_v6  ;;  %v166_v21 = vld [vmem:[#allocation3 + $0x1d8] sm:$0xff]  ;;  %v157_v23 = vld [vmem:[#allocation3 + $0x190] sm:$0xff]  ;;  %v132_v24 = vld [vmem:[#allocation3 + $0xc8] sm:$0xff] }
   0xe   :  { %v54_v12 = vld.sshfl [vmem:[#allocation1] sm:$0xff pattern:$0x75316420]  ;;  %v55_v13 = vld.sshfl [vmem:[#allocation1 + $0x8] sm:$0xff pattern:$0x75316420]  ;;  %200 = vmatpush.msra.mxu3 %v163_v8 }
   0xf   :  { %323 = vmatpush.msk.msra.mxu0 %vm60_vm0, %v54_v12  ;;  %325 = vmatpush.msk.msra.mxu1 %vm60_vm0, %v55_v13  ;;  %v164_v25 = vld [vmem:[#allocation3 + $0x1c8] sm:$0xff]  ;;  %v123_v26 = vld [vmem:[#allocation3 + $0x80] sm:$0xff]  ;;  %v130_v28 = vld [vmem:[#allocation3 + $0xb8] sm:$0xff] }
  0x10   :  { %324 = vmatmul.msk.f32.vlgmr.msra.gmra.mxu0 %vm56_vm1, %v44_v9  ;;  %326 = vmatmul.msk.f32.vlgmr.msra.gmra.mxu1 %vm56_vm1, %v44_v9  ;;  %v155_v27 = vld [vmem:[#allocation3 + $0x180] sm:$0xff]  ;;  %v162_v29 = vld [vmem:[#allocation3 + $0x1b8] sm:$0xff]  ;;  %v121_v30 = vld [vmem:[#allocation3 + $0x70] sm:$0xff] }
  0x11   :  { %217 = vmatpush.msrb.mxu0 %v138_v10  ;;  %237 = vmatpush.msrb.mxu1 %v170_v11  ;;  %v153_v31 = vld [vmem:[#allocation3 + $0x170] sm:$0xff]  ;;  %v128_v32 = vld [vmem:[#allocation3 + $0xa8] sm:$0xff]  ;;  %v119_v34 = vld [vmem:[#allocation3 + $0x60] sm:$0xff] }
  0x12   :  { %181 = vmatpush.msra.mxu2 %v129_v14  ;;  %201 = vmatpush.msra.mxu3 %v161_v15  ;;  %v160_v33 = vld [vmem:[#allocation3 + $0x1a8] sm:$0xff]  ;;  %v151_v35 = vld [vmem:[#allocation3 + $0x160] sm:$0xff]  ;;  %v126_v36 = vld [vmem:[#allocation3 + $0x98] sm:$0xff] }
  0x13   :  { %218 = vmatpush.msrb.mxu0 %v136_v16  ;;  %238 = vmatpush.msrb.mxu1 %v168_v17  ;;  %v158_v37 = vld [vmem:[#allocation3 + $0x198] sm:$0xff]  ;;  %v117_v38 = vld [vmem:[#allocation3 + $0x50] sm:$0xff]  ;;  %v124_v40 = vld [vmem:[#allocation3 + $0x88] sm:$0xff] }
  0x14   :  { %182 = vmatpush.msra.mxu2 %v127_v18  ;;  %202 = vmatpush.msra.mxu3 %v159_v19  ;;  %v149_v39 = vld [vmem:[#allocation3 + $0x150] sm:$0xff]  ;;  %v156_v41 = vld [vmem:[#allocation3 + $0x188] sm:$0xff]  ;;  %v115_v42 = vld [vmem:[#allocation3 + $0x40] sm:$0xff] }
  0x15   :  { %219 = vmatpush.msrb.mxu0 %v134_v20  ;;  %239 = vmatpush.msrb.mxu1 %v166_v21  ;;  %v147_v43 = vld [vmem:[#allocation3 + $0x140] sm:$0xff]  ;;  %v122_v44 = vld [vmem:[#allocation3 + $0x78] sm:$0xff]  ;;  %v113_v46 = vld [vmem:[#allocation3 + $0x30] sm:$0xff] }
  0x16   :  { %183 = vmatpush.msra.mxu2 %v125_v22  ;;  %203 = vmatpush.msra.mxu3 %v157_v23  ;;  %v154_v45 = vld [vmem:[#allocation3 + $0x178] sm:$0xff]  ;;  %v120_v47 = vld [vmem:[#allocation3 + $0x68] sm:$0xff]  ;;  %v111_v54 = vld [vmem:[#allocation3 + $0x20] sm:$0xff] }
  0x17   :  { %220 = vmatpush.msrb.mxu0 %v132_v24  ;;  %240 = vmatpush.msrb.mxu1 %v164_v25  ;;  %v152_v48 = vld [vmem:[#allocation3 + $0x168] sm:$0xff]  ;;  %v118_v49 = vld [vmem:[#allocation3 + $0x58] sm:$0xff]  ;;  %v145_v55 = vld [vmem:[#allocation3 + $0x130] sm:$0xff] }
  0x18   :  { %184 = vmatpush.msra.mxu2 %v123_v26  ;;  %204 = vmatpush.msra.mxu3 %v155_v27  ;;  %v150_v50 = vld [vmem:[#allocation3 + $0x158] sm:$0xff]  ;;  %v116_v51 = vld [vmem:[#allocation3 + $0x48] sm:$0xff]  ;;  %v109_v58 = vld [vmem:[#allocation3 + $0x10] sm:$0xff] }
  0x19   :  { %221 = vmatpush.msrb.mxu0 %v130_v28  ;;  %241 = vmatpush.msrb.mxu1 %v162_v29  ;;  %v148_v52 = vld [vmem:[#allocation3 + $0x148] sm:$0xff]  ;;  %v114_v53 = vld [vmem:[#allocation3 + $0x38] sm:$0xff]  ;;  %v143_v59 = vld [vmem:[#allocation3 + $0x120] sm:$0xff] }
  0x1a   :  { %185 = vmatpush.msra.mxu2 %v121_v30  ;;  %205 = vmatpush.msra.mxu3 %v153_v31  ;;  %v112_v56 = vld [vmem:[#allocation3 + $0x28] sm:$0xff]  ;;  %v146_v57 = vld [vmem:[#allocation3 + $0x138] sm:$0xff]  ;;  %v107_v62 = vld [vmem:[#allocation3] sm:$0xff]  ;;  %v302_v30 = vstv %s460_s6 }
  0x1b   :  { %222 = vmatpush.msrb.mxu0 %v128_v32  ;;  %242 = vmatpush.msrb.mxu1 %v160_v33  ;;  %v110_v60 = vld [vmem:[#allocation3 + $0x18] sm:$0xff]  ;;  %v144_v61 = vld [vmem:[#allocation3 + $0x128] sm:$0xff]  ;;  %v141_v63 = vld [vmem:[#allocation3 + $0x110] sm:$0xff] }
  0x1c   :  { %186 = vmatpush.msra.mxu2 %v119_v34  ;;  %206 = vmatpush.msra.mxu3 %v151_v35  ;;  %v108_v0 = vld [vmem:[#allocation3 + $0x8] sm:$0xff]  ;;  %v142_v1 = vld [vmem:[#allocation3 + $0x118] sm:$0xff]  ;;  %v139_v2 = vld [vmem:[#allocation3 + $0x100] sm:$0xff] }
  0x1d   :  { %223 = vmatpush.msrb.mxu0 %v126_v36  ;;  %243 = vmatpush.msrb.mxu1 %v158_v37  ;;  %v140_v3 = vld [vmem:[#allocation3 + $0x108] sm:$0xff]  ;;  %v46_v4 = vld [vmem:[%s456_s2] sm:$0x3]  ;;  %v260_v24 = vld [vmem:[%s459_s5 + $0x8] sm:$0xff] }
  0x1e   :  { %187 = vmatpush.msra.mxu2 %v117_v38  ;;  %207 = vmatpush.msra.mxu3 %v149_v39  ;;  %v48_v5 = vperm.slane %v46_v4, 0  ;;  %v49_v6 = vperm.slane %v46_v4, 1  ;;  %v171_v13 = vld [vmem:[%s458_s4] sm:$0x3] }
  0x1f   :  { %224 = vmatpush.msrb.mxu0 %v124_v40  ;;  %244 = vmatpush.msrb.mxu1 %v156_v41  ;;  %v174_v14 = vperm.slane %v171_v13, 1  ;;  %v173_v19 = vperm.slane %v171_v13, 0  ;;  %v259_v27 = vld [vmem:[%s459_s5] sm:$0xff] }
  0x20   :  { %188 = vmatpush.msra.mxu2 %v115_v42  ;;  %208 = vmatpush.msra.mxu3 %v147_v43 }
  0x21   :  { %225 = vmatpush.msrb.mxu0 %v122_v44  ;;  %245 = vmatpush.msrb.mxu1 %v154_v45 }
  0x22   :  { %189 = vmatpush.msra.mxu2 %v113_v46  ;;  %209 = vmatpush.msra.mxu3 %v145_v55 }
  0x23   :  { %226 = vmatpush.msrb.mxu0 %v120_v47  ;;  %246 = vmatpush.msrb.mxu1 %v152_v48 }
  0x24   :  { %190 = vmatpush.msra.mxu2 %v111_v54  ;;  %210 = vmatpush.msra.mxu3 %v143_v59 }
  0x25   :  { %227 = vmatpush.msrb.mxu0 %v118_v49  ;;  %247 = vmatpush.msrb.mxu1 %v150_v50 }
  0x26   :  { %191 = vmatpush.msra.mxu2 %v109_v58  ;;  %211 = vmatpush.msra.mxu3 %v141_v63 }
  0x27   :  { %228 = vmatpush.msrb.mxu0 %v116_v51  ;;  %248 = vmatpush.msrb.mxu1 %v148_v52 }
  0x28   :  { %192 = vmatpush.msra.mxu2 %v107_v62  ;;  %212 = vmatpush.msra.mxu3 %v139_v2 }
  0x29   :  { %229 = vmatpush.msrb.mxu0 %v114_v53  ;;  %249 = vmatpush.msrb.mxu1 %v146_v57 }
  0x2b   :  { %230 = vmatpush.msrb.mxu0 %v112_v56  ;;  %250 = vmatpush.msrb.mxu1 %v144_v61 }
  0x2d   :  { %231 = vmatpush.msrb.mxu0 %v110_v60  ;;  %251 = vmatpush.msrb.mxu1 %v142_v1 }
  0x2f   :  { %232 = vmatpush.msrb.mxu0 %v108_v0  ;;  %252 = vmatpush.msrb.mxu1 %v140_v3 }
  0x8d   :  { %v82_v7 = vpop.f32.mrf.mxu0  ;;  %v102_v8 = vpop.f32.mrf.mxu1 }
  0x8e   :  { %v83_v9 = vadd.f32 %v82_v7, %v48_v5  ;;  %v103_v10 = vadd.f32 %v102_v8, %v49_v6 }
  0x90   :  { %v105_v11 = vmax.f32 %v83_v9, 0.0  ;;  %v106_v12 = vmax.f32 %v103_v10, 0.0 }
  0x92   :  { %193 = vmatmul.f32.vlgmr.msra.gmra.mxu2 %v105_v11  ;;  %233 = vmatmul.f32.vlgmr.msrb.gmra.mxu0 %v105_v11 }
  0x93   :  { %213 = vmatmul.f32.vlgmr.msra.gmra.mxu3 %v106_v12  ;;  %253 = vmatmul.f32.vlgmr.msrb.gmra.mxu1 %v106_v12 }
 0x10f   :  { %v234_v15 = vpop.f32.mrf.mxu0 }
 0x110   :  { %v235_v16 = vadd.f32 %v234_v15, %v174_v14  ;;  %v254_v17 = vpop.f32.mrf.mxu1 }
 0x112   :  { %v255_v18 = vadd.f32 %v254_v17, %v235_v16 }
 0x114   :  { %v258_v20 = vmax.f32 %v255_v18, 0.0 }
 0x115   :  { %v194_v21 = vpop.f32.mrf.mxu2 }
 0x116   :  { %v195_v22 = vadd.f32 %v194_v21, %v173_v19  ;;  %296 = vmatpush.xpose.msrb.mxu3 %v258_v20  ;;  %v214_v23 = vpop.f32.mrf.mxu3 }
 0x118   :  { %v215_v25 = vadd.f32 %v214_v23, %v195_v22 }
 0x119   :  { %297 = vmatmul.f32.vlgmr.msrb.gmra.mxu3 %v260_v24 }
 0x11a   :  { %v257_v26 = vmax.f32 %v215_v25, 0.0 }
 0x11c   :  { %276 = vmatpush.xpose.msrb.mxu2 %v257_v26 }
 0x11f   :  { %277 = vmatmul.f32.vlgmr.msrb.gmra.mxu2 %v259_v27 }
 0x19c   :  { %v298_v28 = vpop.f32.mrf.mxu3 }
 0x1a2   :  { %v278_v29 = vpop.f32.mrf.mxu2 }
 0x1a3   :  { %v299_v31 = vadd.f32 %v298_v28, %v278_v29 }
 0x1a5   :  { %v303_v32 = vadd.f32 %v302_v30, %v299_v31 }
 0x1a7   :  { %305 = vst.msk [vmem:[#allocation6] sm:$0x1] %vm304_vm2, %v303_v32 }
 0x1a8   :  { %316 = dma.vmem_to_hbm [thread:$0]  %s312_s18, 16, %s314_s21, [#allocation5]  }
 0x1a9   :  { %381 = dma.done.wait [#allocation5], 16  }
 0x1aa   :  { %382 = vsyncadd [#allocation5], 4294967280 }
 0x1ab   :  { %321 = vsyncpa [#allocation4], 1 }
 0x1ac   :  { %322 = vsyncpa [#allocation5], 1 }

</bundles_post_ra>
